<compile_context>
chip_gen: v5e
topology: v5e:2x2
jax: 0.10.0
libtpu: 0.0.40
codegen_flags: <defaults>
</compile_context>

<pallas_src>
import jax
import jax.numpy as jnp
from jax.experimental import pallas as pl
from jax.experimental.pallas import tpu as pltpu

OUT_CH = 4          # hard-coded in AttentionBlock.__init__
KSIZE = 3           # TimeBlock default kernel_size
NEG_SLOPE = 0.01    # F.leaky_relu default
LANE = 128          # TPU lane width


# ---------------------------------------------------------------------------
# Fused kernel: one grid step processes Bt batch elements.
#   x_ref      : (Bt*N, T*C)    raw input rows (row = (batch, node))
#   wbig_ref   : (T*C, 2*128)   unrolled temporal convs: [conv1+conv3 | conv2],
#                               each block 128-lane aligned, padded with zeros
#   bbig_ref   : (1, 2*128)     matching biases
#   w12_ref    : (2, 128)       fc weight halves (row0 = node-i half, row1 = j)
#   selmod_ref : (N, Bt*N)      selmod[i,k] = (k % N == i)
#   sameblk_ref: (Bt*N, Bt*N)   block-diagonal ones (N x N blocks)
#   lastsel_ref: (Bt*N, Bt*N)   sameblk restricted to rows with k % N == N-1
#   bfc_ref    : (1,)  SMEM     fc bias scalar
#   atile_ref  : (N, Bt*N)      adjacency tiled Bt times along lanes
#   o_ref      : (1, N, Bt*N)   Bt attention matrices side-by-side (lane-dense)
# ---------------------------------------------------------------------------
def fused_attention_kernel(x_ref, wbig_ref, bbig_ref, w12_ref, selmod_ref,
                           sameblk_ref, lastsel_ref, bfc_ref, atile_ref, o_ref):
    N = selmod_ref.shape[0]

    # --- TimeBlock: one matmul; conv1+conv3 pre-folded, slices lane-aligned ---
    y = jnp.dot(x_ref[...], wbig_ref[...],
                preferred_element_type=jnp.float32) + bbig_ref[...]
    c13 = y[:, :LANE]                                   # fused conv1 + conv3
    c2 = y[:, LANE:]                                    # conv2
    sig2 = 0.5 * (jnp.tanh(0.5 * c2) + 1.0)             # stable sigmoid (EUP)
    t = jnp.maximum(c13 + sig2, 0.0)                    # (Bt*N, 128); pad cols
                                                        # hold 0.5, killed by
                                                        # zero rows of w12

    # --- fc scores: uv[0,r] = t[r].w1 (node-i term), uv[1,r] = t[r].w2 ---
    uv = jax.lax.dot_general(w12_ref[...], t, (((1,), (1,)), ((), ())),
                             preferred_element_type=jnp.float32)   # (2, Bt*N)
    q_row = uv[0:1, :]                                  # (1, Bt*N)
    v_row = uv[1:2, :]                                  # (1, Bt*N)
    # u_bc[i, bt*N+j] = q[bt*N+i]  (row term, rearranged via one matmul)
    u_bc = jnp.dot(selmod_ref[...] * q_row, sameblk_ref[...],
                   preferred_element_type=jnp.float32)  # (N, Bt*N)
    score = u_bc + v_row + bfc_ref[0]
    score = jnp.maximum(score, NEG_SLOPE * score)       # leaky_relu

    a = atile_ref[...]
    att = jnp.where(a != 0.0, score, 0.0)   # non-edges enter softmax as 0
                                            # (matches the torch semantics)

    # --- segmented softmax over per-batch blocks of N lanes ---
    # Sliding-window max of width N via lane rotates; the value at each block's
    # last lane is the block max, broadcast back over the block by lastsel.
    w = att
    cover = 1
    while cover < N:                        # static Python loop (N power of 2)
        shift = min(cover, N - cover)
        w = jnp.maximum(w, pltpu.roll(w, shift, axis=1))
        cover += shift
    m_bc = jnp.dot(w, lastsel_ref[...], preferred_element_type=jnp.float32)
    e = jnp.exp(att - m_bc)
    s_bc = jnp.dot(e, sameblk_ref[...], preferred_element_type=jnp.float32)
    o_ref[0] = (e * pl.reciprocal(s_bc, approx=True)) * a


# ---------------------------------------------------------------------------
# One-time parameter / constant preparation (hoisted out of the forward path)
# ---------------------------------------------------------------------------
def conv_weight_to_mat(W):
    """torch Conv2d weight (OUT_CH, C_in, K) -> (K*C_in, OUT_CH), (k, c) row order."""
    return jnp.transpose(W, (2, 1, 0)).reshape(W.shape[2] * W.shape[1], W.shape[0])


def prepare_attention_block(params, A, T, C):
    """Build all kernel-side constants once (not per forward call)."""
    K = KSIZE
    T_out = T - K + 1
    F_ = T_out * OUT_CH
    assert F_ <= LANE, "att_dim * out_channels must fit in one 128-lane block"
    N = A.shape[0]
    assert N <= LANE and (N & (N - 1)) == 0, "N must be a power of two <= 128"
    Bt = LANE // N
    L = Bt * N                                           # = 128 lanes

    # Fold conv1 + conv3 (linear in x) and unroll the (1,K) temporal conv into
    # a single matmul weight; each block is padded to a 128-lane boundary.
    w13 = conv_weight_to_mat(params["w_c1"]) + conv_weight_to_mat(params["w_c3"])
    w2m = conv_weight_to_mat(params["w_c2"])
    W_big = jnp.zeros((T * C, 2 * LANE), jnp.float32)
    for to in range(T_out):
        r0 = to * C
        W_big = W_big.at[r0:r0 + K * C, to * OUT_CH:(to + 1) * OUT_CH].set(w13)
        W_big = W_big.at[r0:r0 + K * C,
                         LANE + to * OUT_CH:LANE + (to + 1) * OUT_CH].set(w2m)
    b_big = jnp.zeros((1, 2 * LANE), jnp.float32)
    b_big = b_big.at[0, :F_].set(jnp.tile(params["b_c1"] + params["b_c3"], T_out))
    b_big = b_big.at[0, LANE:LANE + F_].set(jnp.tile(params["b_c2"], T_out))

    # fc weight halves as one (2, 128) LHS (zero-padded rows kill t's pad cols).
    w12 = jnp.zeros((2, LANE), jnp.float32)
    w12 = w12.at[0, :F_].set(params["w_fc"][0, :F_])
    w12 = w12.at[1, :F_].set(params["w_fc"][0, F_:])

    # Layout constants for the lane-dense (N, Bt*N) score layout.
    k = jnp.arange(L)
    blk = k // N
    selmod = (k[None, :] % N == jnp.arange(N)[:, None]).astype(jnp.float32)
    sameblk = (blk[:, None] == blk[None, :]).astype(jnp.float32)
    lastsel = sameblk * ((k % N) == (N - 1)).astype(jnp.float32)[:, None]
    a_tiled = jnp.tile(A.astype(jnp.float32), (1, Bt))

    return {"W_big": W_big, "b_big": b_big, "w12": w12,
            "bfc": params["b_fc"].reshape(1).astype(jnp.float32),
            "selmod": selmod, "sameblk": sameblk, "lastsel": lastsel,
            "a_tiled": a_tiled}


# ---------------------------------------------------------------------------
# Forward wrapper
# ---------------------------------------------------------------------------
@jax.jit
def attention_block_forward(X, prepared):
    B, N, T, C = X.shape
    a_tiled = prepared["a_tiled"]
    L = a_tiled.shape[1]
    Bt = L // N
    G = -(-B // Bt)                      # cdiv
    Bpad = G * Bt
    TC = T * C

    X2 = X.reshape(B, N, TC)
    if Bpad != B:                        # pad batch to a multiple of Bt
        X2 = jnp.concatenate(
            [X2, jnp.zeros((Bpad - B, N, TC), X2.dtype)], axis=0)
    x_rows = X2.reshape(Bpad * N, TC).astype(jnp.float32)   # row = (batch, node)

    att_wide = pl.pallas_call(
        fused_attention_kernel,
        out_shape=jax.ShapeDtypeStruct((G, N, L), jnp.float32),
        grid=(G,),
        in_specs=[
            pl.BlockSpec((Bt * N, TC), lambda g: (g, 0)),          # x rows
            pl.BlockSpec((TC, 2 * LANE), lambda g: (0, 0)),        # W_big
            pl.BlockSpec((1, 2 * LANE), lambda g: (0, 0)),         # b_big
            pl.BlockSpec((2, LANE), lambda g: (0, 0)),             # w12
            pl.BlockSpec((N, L), lambda g: (0, 0)),                # selmod
            pl.BlockSpec((L, L), lambda g: (0, 0)),                # sameblk
            pl.BlockSpec((L, L), lambda g: (0, 0)),                # lastsel
            pl.BlockSpec(memory_space=pltpu.MemorySpace.SMEM),     # fc bias
            pl.BlockSpec((N, L), lambda g: (0, 0)),                # A tiled
        ],
        out_specs=pl.BlockSpec((1, N, L), lambda g: (g, 0, 0)),
        compiler_params=pltpu.CompilerParams(
            dimension_semantics=("parallel",)),
    )(x_rows, prepared["W_big"], prepared["b_big"], prepared["w12"],
      prepared["selmod"], prepared["sameblk"], prepared["lastsel"],
      prepared["bfc"], a_tiled)

    # lane-dense (G, N, Bt*N) -> (B, N, N)
    att = att_wide.reshape(G, N, Bt, N).transpose(0, 2, 1, 3).reshape(Bpad, N, N)
    return att[:B]


# ---------------------------------------------------------------------------
# Pure-JAX reference (mirrors the PyTorch forward exactly)
# ---------------------------------------------------------------------------
def im2col_time(X, k):
    B, N, T, C = X.shape
    T_out = T - k + 1
    patches = jnp.stack([X[:, :, i:i + T_out, :] for i in range(k)], axis=3)
    return patches.reshape(B, N, T_out, k * C)


def reference_forward(X, A, params):
    B, N, T, C = X.shape
    T_out = T - KSIZE + 1
    F_ = T_out * OUT_CH

    def conv(Xi, W, b):
        patches = im2col_time(Xi, KSIZE)
        return patches @ conv_weight_to_mat(W) + b

    c1 = conv(X, params["w_c1"], params["b_c1"])
    c2 = conv(X, params["w_c2"], params["b_c2"])
    c3 = conv(X, params["w_c3"], params["b_c3"])
    t = jnp.maximum(c1 + jax.nn.sigmoid(c2) + c3, 0.0)      # (B, N, T_out, 4)
    t_flat = t.reshape(B, N, F_)

    w_fc, b_fc = params["w_fc"], params["b_fc"]
    u = t_flat @ w_fc[0, :F_]                               # (B, N)
    v = t_flat @ w_fc[0, F_:]                               # (B, N)
    score = u[:, :, None] + v[:, None, :] + b_fc[0]
    score = jnp.where(score >= 0.0, score, NEG_SLOPE * score)
    att = jnp.where((A != 0.0)[None], score, 0.0)
    att = jax.nn.softmax(att, axis=2) * A[None]
    return att


# ---------------------------------------------------------------------------
if __name__ == "__main__":
    # B=32, N=8 -> Bt = 128//8 = 16 batches per grid step, grid=(2,)
    B, N, T, C_in = 32, 8, 8, 4          # -> T_out = 6, att_dim = 6, fc in = 48
    key = jax.random.PRNGKey(0)
    ks = jax.random.split(key, 12)

    F_ = (T - KSIZE + 1) * OUT_CH
    params = {
        "w_c1": 0.2 * jax.random.normal(ks[0], (OUT_CH, C_in, KSIZE), jnp.float32),
        "b_c1": 0.1 * jax.random.normal(ks[1], (OUT_CH,), jnp.float32),
        "w_c2": 0.2 * jax.random.normal(ks[2], (OUT_CH, C_in, KSIZE), jnp.float32),
        "b_c2": 0.1 * jax.random.normal(ks[3], (OUT_CH,), jnp.float32),
        "w_c3": 0.2 * jax.random.normal(ks[4], (OUT_CH, C_in, KSIZE), jnp.float32),
        "b_c3": 0.1 * jax.random.normal(ks[5], (OUT_CH,), jnp.float32),
        "w_fc": 0.2 * jax.random.normal(ks[6], (1, 2 * F_), jnp.float32),
        "b_fc": 0.1 * jax.random.normal(ks[7], (1,), jnp.float32),
    }

    X = jax.random.normal(ks[8], (B, N, T, C_in), jnp.float32)
    A = (jax.random.uniform(ks[9], (N, N)) < 0.6).astype(jnp.float32)

    prepared = prepare_attention_block(params, A, T, C_in)   # one-time setup
    out = attention_block_forward(X, prepared)
    out = jax.block_until_ready(out)

    ref = reference_forward(X, A, params)
    assert out.shape == (B, N, N)
    assert jnp.allclose(out, ref, atol=5e-3, rtol=5e-3), (
        f"max abs diff {jnp.max(jnp.abs(out - ref))}")

    print("KERNEL_OK")
</pallas_src>

<mosaic_0001>
module attributes {stable_mosaic.version = 11 : i64} {
  func.func @fused_attention_kernel(%arg0: i32, %arg1: memref<128x32xf32, #tpu.memory_space<vmem>>, %arg2: memref<32x256xf32, #tpu.memory_space<vmem>>, %arg3: memref<1x256xf32, #tpu.memory_space<vmem>>, %arg4: memref<2x128xf32, #tpu.memory_space<vmem>>, %arg5: memref<8x128xf32, #tpu.memory_space<vmem>>, %arg6: memref<128x128xf32, #tpu.memory_space<vmem>>, %arg7: memref<128x128xf32, #tpu.memory_space<vmem>>, %arg8: memref<1xf32, #tpu.memory_space<smem>>, %arg9: memref<8x128xf32, #tpu.memory_space<vmem>>, %arg10: memref<1x8x128xf32, #tpu.memory_space<vmem>>) attributes {dimension_semantics = [#tpu.dimension_semantics<parallel>], iteration_bounds = array<i64: 2>, scalar_prefetch = 0 : i64, scratch_operands = 0 : i64, tpu.core_type = #tpu.core_type<tc>, window_params = [{transform_indices = @transform_0, window_bounds = array<i64: 128, 32>}, {pipeline_mode = #tpu.pipeline_mode<synchronous>, transform_indices = @transform_1, window_bounds = array<i64: 32, 256>}, {pipeline_mode = #tpu.pipeline_mode<synchronous>, transform_indices = @transform_2, window_bounds = array<i64: 1, 256>}, {pipeline_mode = #tpu.pipeline_mode<synchronous>, transform_indices = @transform_3, window_bounds = array<i64: 2, 128>}, {pipeline_mode = #tpu.pipeline_mode<synchronous>, transform_indices = @transform_4, window_bounds = array<i64: 8, 128>}, {pipeline_mode = #tpu.pipeline_mode<synchronous>, transform_indices = @transform_5, window_bounds = array<i64: 128, 128>}, {pipeline_mode = #tpu.pipeline_mode<synchronous>, transform_indices = @transform_6, window_bounds = array<i64: 128, 128>}, {transform_indices = @transform_7, window_bounds = array<i64: 1>}, {pipeline_mode = #tpu.pipeline_mode<synchronous>, transform_indices = @transform_8, window_bounds = array<i64: 8, 128>}, {transform_indices = @transform_9, window_bounds = array<i64: 1, 8, 128>}]} {
    %c0 = arith.constant 0 : index
    %c0_0 = arith.constant 0 : index
    %0 = vector.load %arg1[%c0, %c0_0] : memref<128x32xf32, #tpu.memory_space<vmem>>, vector<128x32xf32>
    %c0_1 = arith.constant 0 : index
    %c0_2 = arith.constant 0 : index
    %1 = vector.load %arg2[%c0_1, %c0_2] : memref<32x256xf32, #tpu.memory_space<vmem>>, vector<32x256xf32>
    %cst = arith.constant dense<0.000000e+00> : vector<128x256xf32>
    %2 = tpu.matmul %0, %1, %cst {dimension_numbers = #tpu.dot_dimension_numbers<[1], [0], [0], [1], [0, 0, 1, 1], [], []>} : vector<128x32xf32>, vector<32x256xf32>, vector<128x256xf32> -> vector<128x256xf32>
    %c0_3 = arith.constant 0 : index
    %c0_4 = arith.constant 0 : index
    %3 = vector.load %arg3[%c0_3, %c0_4] : memref<1x256xf32, #tpu.memory_space<vmem>>, vector<1x256xf32>
    %4 = vector.broadcast %3 : vector<1x256xf32> to vector<128x256xf32>
    %5 = arith.addf %2, %4 : vector<128x256xf32>
    %6 = vector.extract_strided_slice %5 {offsets = [0, 0], sizes = [128, 128], strides = [1, 1]} : vector<128x256xf32> to vector<128x128xf32>
    %7 = vector.extract_strided_slice %5 {offsets = [0, 128], sizes = [128, 128], strides = [1, 1]} : vector<128x256xf32> to vector<128x128xf32>
    %cst_5 = arith.constant 5.000000e-01 : f32
    %8 = vector.broadcast %cst_5 : f32 to vector<128x128xf32>
    %9 = arith.mulf %8, %7 : vector<128x128xf32>
    %10 = math.tanh %9 : vector<128x128xf32>
    %cst_6 = arith.constant 1.000000e+00 : f32
    %11 = vector.broadcast %cst_6 : f32 to vector<128x128xf32>
    %12 = arith.addf %10, %11 : vector<128x128xf32>
    %cst_7 = arith.constant 5.000000e-01 : f32
    %13 = vector.broadcast %cst_7 : f32 to vector<128x128xf32>
    %14 = arith.mulf %13, %12 : vector<128x128xf32>
    %15 = arith.addf %6, %14 : vector<128x128xf32>
    %cst_8 = arith.constant 0.000000e+00 : f32
    %16 = vector.broadcast %cst_8 : f32 to vector<128x128xf32>
    %17 = arith.maximumf %15, %16 : vector<128x128xf32>
    %c0_9 = arith.constant 0 : index
    %c0_10 = arith.constant 0 : index
    %18 = vector.load %arg4[%c0_9, %c0_10] : memref<2x128xf32, #tpu.memory_space<vmem>>, vector<2x128xf32>
    %cst_11 = arith.constant dense<0.000000e+00> : vector<2x128xf32>
    %19 = tpu.matmul %18, %17, %cst_11 {dimension_numbers = #tpu.dot_dimension_numbers<[1], [1], [0], [0], [0, 0, 1, 0], [], []>} : vector<2x128xf32>, vector<128x128xf32>, vector<2x128xf32> -> vector<2x128xf32>
    %20 = vector.extract_strided_slice %19 {offsets = [0, 0], sizes = [1, 128], strides = [1, 1]} : vector<2x128xf32> to vector<1x128xf32>
    %21 = vector.extract_strided_slice %19 {offsets = [1, 0], sizes = [1, 128], strides = [1, 1]} : vector<2x128xf32> to vector<1x128xf32>
    %c0_12 = arith.constant 0 : index
    %c0_13 = arith.constant 0 : index
    %22 = vector.load %arg5[%c0_12, %c0_13] : memref<8x128xf32, #tpu.memory_space<vmem>>, vector<8x128xf32>
    %23 = vector.broadcast %20 : vector<1x128xf32> to vector<8x128xf32>
    %24 = arith.mulf %22, %23 : vector<8x128xf32>
    %c0_14 = arith.constant 0 : index
    %c0_15 = arith.constant 0 : index
    %25 = vector.load %arg6[%c0_14, %c0_15] : memref<128x128xf32, #tpu.memory_space<vmem>>, vector<128x128xf32>
    %cst_16 = arith.constant dense<0.000000e+00> : vector<8x128xf32>
    %26 = tpu.matmul %24, %25, %cst_16 {dimension_numbers = #tpu.dot_dimension_numbers<[1], [0], [0], [1], [0, 0, 1, 1], [], []>} : vector<8x128xf32>, vector<128x128xf32>, vector<8x128xf32> -> vector<8x128xf32>
    %27 = vector.broadcast %21 : vector<1x128xf32> to vector<8x128xf32>
    %28 = arith.addf %26, %27 : vector<8x128xf32>
    %c0_17 = arith.constant 0 : index
    %29 = memref.load %arg8[%c0_17] : memref<1xf32, #tpu.memory_space<smem>>
    %30 = vector.broadcast %29 : f32 to vector<8x128xf32>
    %31 = arith.addf %28, %30 : vector<8x128xf32>
    %cst_18 = arith.constant 0.00999999977 : f32
    %32 = vector.broadcast %cst_18 : f32 to vector<8x128xf32>
    %33 = arith.mulf %32, %31 : vector<8x128xf32>
    %34 = arith.maximumf %31, %33 : vector<8x128xf32>
    %c0_19 = arith.constant 0 : index
    %c0_20 = arith.constant 0 : index
    %35 = vector.load %arg9[%c0_19, %c0_20] : memref<8x128xf32, #tpu.memory_space<vmem>>, vector<8x128xf32>
    %cst_21 = arith.constant 0.000000e+00 : f32
    %36 = vector.broadcast %cst_21 : f32 to vector<8x128xf32>
    %37 = arith.cmpf one, %35, %36 : vector<8x128xf32>
    %cst_22 = arith.constant 0.000000e+00 : f32
    %38 = vector.broadcast %cst_22 : f32 to vector<8x128xf32>
    %39 = arith.select %37, %34, %38 : vector<8x128xi1>, vector<8x128xf32>
    %c1_i32 = arith.constant 1 : i32
    %40 = tpu.dynamic_rotate %39 by %c1_i32 dim 1 : vector<8x128xf32>, i32 -> vector<8x128xf32>
    %41 = arith.maximumf %39, %40 : vector<8x128xf32>
    %c2_i32 = arith.constant 2 : i32
    %42 = tpu.dynamic_rotate %41 by %c2_i32 dim 1 : vector<8x128xf32>, i32 -> vector<8x128xf32>
    %43 = arith.maximumf %41, %42 : vector<8x128xf32>
    %c4_i32 = arith.constant 4 : i32
    %44 = tpu.dynamic_rotate %43 by %c4_i32 dim 1 : vector<8x128xf32>, i32 -> vector<8x128xf32>
    %45 = arith.maximumf %43, %44 : vector<8x128xf32>
    %c0_23 = arith.constant 0 : index
    %c0_24 = arith.constant 0 : index
    %46 = vector.load %arg7[%c0_23, %c0_24] : memref<128x128xf32, #tpu.memory_space<vmem>>, vector<128x128xf32>
    %cst_25 = arith.constant dense<0.000000e+00> : vector<8x128xf32>
    %47 = tpu.matmul %45, %46, %cst_25 {dimension_numbers = #tpu.dot_dimension_numbers<[1], [0], [0], [1], [0, 0, 1, 1], [], []>} : vector<8x128xf32>, vector<128x128xf32>, vector<8x128xf32> -> vector<8x128xf32>
    %48 = arith.subf %39, %47 : vector<8x128xf32>
    %49 = math.exp %48 : vector<8x128xf32>
    %c0_26 = arith.constant 0 : index
    %c0_27 = arith.constant 0 : index
    %50 = vector.load %arg6[%c0_26, %c0_27] : memref<128x128xf32, #tpu.memory_space<vmem>>, vector<128x128xf32>
    %cst_28 = arith.constant dense<0.000000e+00> : vector<8x128xf32>
    %51 = tpu.matmul %49, %50, %cst_28 {dimension_numbers = #tpu.dot_dimension_numbers<[1], [0], [0], [1], [0, 0, 1, 1], [], []>} : vector<8x128xf32>, vector<128x128xf32>, vector<8x128xf32> -> vector<8x128xf32>
    %52 = tpu.reciprocal %51 {approx = true} : vector<8x128xf32> -> vector<8x128xf32>
    %53 = arith.mulf %49, %52 : vector<8x128xf32>
    %54 = arith.mulf %53, %35 : vector<8x128xf32>
    %c0_29 = arith.constant 0 : index
    %c0_30 = arith.constant 0 : index
    %c0_31 = arith.constant 0 : index
    %55 = vector.load %arg10[%c0_29, %c0_30, %c0_31] : memref<1x8x128xf32, #tpu.memory_space<vmem>>, vector<1x8x128xf32>
    %56 = vector.shape_cast %55 : vector<1x8x128xf32> to vector<8x128xf32>
    %57 = vector.shape_cast %54 : vector<8x128xf32> to vector<1x8x128xf32>
    tpu.vector_store %arg10[%c0_29, %c0_30, %c0_31], %57 {strides = array<i32>} : memref<1x8x128xf32, #tpu.memory_space<vmem>>, vector<1x8x128xf32>,
    return
  }
  func.func @transform_0(%arg0: i32) -> (i32, i32) {
    %c0_i32 = arith.constant 0 : i32
    %c0_i32_0 = arith.constant 0 : i32
    return %arg0, %c0_i32 : i32, i32
  }
  func.func @transform_1(%arg0: i32) -> (i32, i32) {
    %c0_i32 = arith.constant 0 : i32
    %c0_i32_0 = arith.constant 0 : i32
    %c0_i32_1 = arith.constant 0 : i32
    return %c0_i32, %c0_i32_0 : i32, i32
  }
  func.func @transform_2(%arg0: i32) -> (i32, i32) {
    %c0_i32 = arith.constant 0 : i32
    %c0_i32_0 = arith.constant 0 : i32
    %c0_i32_1 = arith.constant 0 : i32
    return %c0_i32, %c0_i32_0 : i32, i32
  }
  func.func @transform_3(%arg0: i32) -> (i32, i32) {
    %c0_i32 = arith.constant 0 : i32
    %c0_i32_0 = arith.constant 0 : i32
    %c0_i32_1 = arith.constant 0 : i32
    return %c0_i32, %c0_i32_0 : i32, i32
  }
  func.func @transform_4(%arg0: i32) -> (i32, i32) {
    %c0_i32 = arith.constant 0 : i32
    %c0_i32_0 = arith.constant 0 : i32
    %c0_i32_1 = arith.constant 0 : i32
    return %c0_i32, %c0_i32_0 : i32, i32
  }
  func.func @transform_5(%arg0: i32) -> (i32, i32) {
    %c0_i32 = arith.constant 0 : i32
    %c0_i32_0 = arith.constant 0 : i32
    %c0_i32_1 = arith.constant 0 : i32
    return %c0_i32, %c0_i32_0 : i32, i32
  }
  func.func @transform_6(%arg0: i32) -> (i32, i32) {
    %c0_i32 = arith.constant 0 : i32
    %c0_i32_0 = arith.constant 0 : i32
    %c0_i32_1 = arith.constant 0 : i32
    return %c0_i32, %c0_i32_0 : i32, i32
  }
  func.func @transform_7(%arg0: i32) -> i32 {
    %c0_i32 = arith.constant 0 : i32
    %c0_i32_0 = arith.constant 0 : i32
    return %c0_i32 : i32
  }
  func.func @transform_8(%arg0: i32) -> (i32, i32) {
    %c0_i32 = arith.constant 0 : i32
    %c0_i32_0 = arith.constant 0 : i32
    %c0_i32_1 = arith.constant 0 : i32
    return %c0_i32, %c0_i32_0 : i32, i32
  }
  func.func @transform_9(%arg0: i32) -> (i32, i32, i32) {
    %c0_i32 = arith.constant 0 : i32
    %c0_i32_0 = arith.constant 0 : i32
    %c0_i32_1 = arith.constant 0 : i32
    return %arg0, %c0_i32, %c0_i32_0 : i32, i32, i32
  }
}

</mosaic_0001>

<bundles_post_ra>
// kernel: attention_block_forward.1
= control target key start
LH: loop header
LB: loop body
LE: loop exit
PB: predicated region body
PF: predicated region fallthrough
CT: control target
= control target key end

     0   :  { %s986_s11 = smov 0   ;;  %s1263_s0 = inlined_call_operand.vmem [shape: f32[256,32], index: 0, kind: input, shape index: {}]   ;;  %s1264_s1 = inlined_call_operand.vmem [shape: f32[32,256], index: 1, kind: input, shape index: {}]   ;;  %s1265_s2 = inlined_call_operand.vmem [shape: f32[1,256], index: 2, kind: input, shape index: {}]   ;;  %s1266_s3 = inlined_call_operand.vmem [shape: f32[2,128], index: 3, kind: input, shape index: {}]   ;;  %s1267_s4 = inlined_call_operand.vmem [shape: f32[8,128], index: 4, kind: input, shape index: {}]   ;;  %s1268_s5 = inlined_call_operand.vmem [shape: f32[128,128], index: 5, kind: input, shape index: {}]   ;;  %s1269_s6 = inlined_call_operand.vmem [shape: f32[128,128], index: 6, kind: input, shape index: {}]   ;;  %s1270_s7 = inlined_call_operand.<no memory space> [shape: f32[1], index: 7, kind: input, shape index: {}]   ;;  %s1271_s8 = inlined_call_operand.vmem [shape: f32[8,128], index: 8, kind: input, shape index: {}]   ;;  %s1272_s9 = inlined_call_operand.vmem [shape: f32[2,8,128], index: 9, kind: output, shape index: {}]  }
   0x1   :  { %14 = sst [smem:[#allocation2]] %s1270_s7 }
   0x2 LB: > { %s992_s12 = sadd.s32 4294967295, %s928_s11   ;;  %p837_p0 = scmp.ge.s32.totalorder %s928_s11, 1  ;;  %s928_s11 = sphi %s986_s11, %s20_s11  }
   0x3   : > { %p289_p1 = scmp.lt.s32.totalorder %s928_s11, 3 }
   0x5   : > { %p290_p2 = pnand %p837_p0, %p289_p1 }
   0x6   : > { %s838_s16 = sshll.u32 (!%p290_p2), %s992_s12, 4  ;;  %s700_s10 = sld [smem:[#allocation2]] (!%p290_p2) }
   0x7   : > { %293 = sbr.rel (%p290_p2) target bundleno = 1263 (0x4ef), region = 56  ;;  %p325_p3 = scmp.lt.s32.totalorder (!%p290_p2), %s838_s16, 31 }
   0x8   : > { %s930_s7 = smov (!%p290_p2), 1   ;;  %s931_s15 = smov (!%p290_p2), 2  }
   0x9   : > { %s932_s26 = smov (!%p290_p2), 4   ;;  %p330_p4 = scmp.lt.s32.totalorder (!%p290_p2), %s992_s12, 1 }
   0xc   : > { %v357_v0 = vld [vmem:[%s1264_s1 + $0x38] sm:$0xff]  ;;  %v355_v1 = vld [vmem:[%s1264_s1 + $0x28] sm:$0xff]  ;;  %v356_v2 = vld [vmem:[%s1264_s1 + $0x30] sm:$0xff]  ;;  %s1274_s16 = smov (!%p325_p3, %s838_s16), 31  ;;  %vm364_vm0 = vcmask 261120   ;;  %s1276_s12 = smov (!%p330_p4, %s992_s12), 1 }
   0xd   : > { %490 = vmatpush.msra.mxu1 %v357_v0  ;;  %v354_v3 = vld [vmem:[%s1264_s1 + $0x20] sm:$0xff]  ;;  %v353_v4 = vld [vmem:[%s1264_s1 + $0x18] sm:$0xff]  ;;  %425 = vmatpush.msra.mxu0 %v356_v2  ;;  %v352_v5 = vld [vmem:[%s1264_s1 + $0x10] sm:$0xff]  ;;  %s839_s27 = sshll.u32 %s1274_s16, 3  ;;  %s840_s29 = sshll.u32 %s1276_s12, 3 }
   0xe   : > { %v351_v6 = vld [vmem:[%s1264_s1 + $0x8] sm:$0xff]  ;;  %v350_v7 = vld [vmem:[%s1264_s1] sm:$0xff]  ;;  %s1024_s13 = scalar_lea.vmem %s1263_s0, %s839_s27 }
   0xf   : > { %491 = vmatpush.msra.mxu1 %v355_v1  ;;  %426 = vmatpush.msra.mxu0 %v354_v3  ;;  %v334_v8 = vld [vmem:[%s1024_s13] sm:$0xff]  ;;  %v335_v9 = vld [vmem:[%s1024_s13 + $0x8] sm:$0xff]  ;;  %v336_v10 = vld [vmem:[%s1024_s13 + $0x10] sm:$0xff] }
  0x10   : > { %v337_v11 = vld [vmem:[%s1024_s13 + $0x18] sm:$0xff]  ;;  %v338_v12 = vld [vmem:[%s1024_s13 + $0x20] sm:$0xff]  ;;  %v339_v13 = vld [vmem:[%s1024_s13 + $0x28] sm:$0xff] }
  0x11   : > { %492 = vmatpush.msra.mxu1 %v353_v4  ;;  %427 = vmatpush.msra.mxu0 %v352_v5  ;;  %v340_v14 = vld [vmem:[%s1024_s13 + $0x30] sm:$0xff]  ;;  %v341_v15 = vld [vmem:[%s1024_s13 + $0x38] sm:$0xff]  ;;  %v342_v16 = vld [vmem:[%s1024_s13 + $0x40] sm:$0xff] }
  0x12   : > { %v343_v17 = vld [vmem:[%s1024_s13 + $0x48] sm:$0xff]  ;;  %v344_v18 = vld [vmem:[%s1024_s13 + $0x50] sm:$0xff]  ;;  %v345_v19 = vld [vmem:[%s1024_s13 + $0x58] sm:$0xff] }
  0x13   : > { %493 = vmatpush.msra.mxu1 %v351_v6  ;;  %428 = vmatpush.msra.mxu0 %v350_v7  ;;  %v346_v20 = vld [vmem:[%s1024_s13 + $0x60] sm:$0xff]  ;;  %v347_v21 = vld [vmem:[%s1024_s13 + $0x68] sm:$0xff]  ;;  %v348_v22 = vld [vmem:[%s1024_s13 + $0x70] sm:$0xff] }
  0x14   : > { %857 = vmatmul.msk.f32.vlgmr.msra.gmra.mxu1 %vm364_vm0, %v334_v8  ;;  %841 = vmatmul.msk.f32.vlgmr.msra.gmra.mxu0 %vm364_vm0, %v334_v8  ;;  %v349_v23 = vld [vmem:[%s1024_s13 + $0x78] sm:$0xff]  ;;  %v358_v24 = vld [vmem:[%s1265_s2] sm:$0x3]  ;;  %s333_s13 = scalar_lea.vmem %s1272_s9, %s840_s29 }
  0x15   : > { %v1077_v25 = vperm.slane %v358_v24, 1  ;;  %v1080_v31 = vperm.slane %v358_v24, 0 }
  0x1c   : > { %858 = vmatmul.msk.f32.gmra.mxu1 %vm364_vm0, %v335_v9  ;;  %842 = vmatmul.msk.f32.gmra.mxu0 %vm364_vm0, %v335_v9 }
  0x24   : > { %859 = vmatmul.msk.f32.gmra.mxu1 %vm364_vm0, %v336_v10  ;;  %843 = vmatmul.msk.f32.gmra.mxu0 %vm364_vm0, %v336_v10 }
  0x2c   : > { %860 = vmatmul.msk.f32.gmra.mxu1 %vm364_vm0, %v337_v11  ;;  %844 = vmatmul.msk.f32.gmra.mxu0 %vm364_vm0, %v337_v11 }
  0x34   : > { %861 = vmatmul.msk.f32.gmra.mxu1 %vm364_vm0, %v338_v12  ;;  %845 = vmatmul.msk.f32.gmra.mxu0 %vm364_vm0, %v338_v12 }
  0x3c   : > { %862 = vmatmul.msk.f32.gmra.mxu1 %vm364_vm0, %v339_v13  ;;  %846 = vmatmul.msk.f32.gmra.mxu0 %vm364_vm0, %v339_v13 }
  0x44   : > { %863 = vmatmul.msk.f32.gmra.mxu1 %vm364_vm0, %v340_v14  ;;  %847 = vmatmul.msk.f32.gmra.mxu0 %vm364_vm0, %v340_v14 }
  0x4c   : > { %864 = vmatmul.msk.f32.gmra.mxu1 %vm364_vm0, %v341_v15  ;;  %848 = vmatmul.msk.f32.gmra.mxu0 %vm364_vm0, %v341_v15 }
  0x54   : > { %865 = vmatmul.msk.f32.gmra.mxu1 %vm364_vm0, %v342_v16  ;;  %849 = vmatmul.msk.f32.gmra.mxu0 %vm364_vm0, %v342_v16 }
  0x5c   : > { %866 = vmatmul.msk.f32.gmra.mxu1 %vm364_vm0, %v343_v17  ;;  %850 = vmatmul.msk.f32.gmra.mxu0 %vm364_vm0, %v343_v17 }
  0x64   : > { %867 = vmatmul.msk.f32.gmra.mxu1 %vm364_vm0, %v344_v18  ;;  %851 = vmatmul.msk.f32.gmra.mxu0 %vm364_vm0, %v344_v18 }
  0x6c   : > { %868 = vmatmul.msk.f32.gmra.mxu1 %vm364_vm0, %v345_v19  ;;  %852 = vmatmul.msk.f32.gmra.mxu0 %vm364_vm0, %v345_v19 }
  0x74   : > { %869 = vmatmul.msk.f32.gmra.mxu1 %vm364_vm0, %v346_v20  ;;  %853 = vmatmul.msk.f32.gmra.mxu0 %vm364_vm0, %v346_v20 }
  0x7c   : > { %870 = vmatmul.msk.f32.gmra.mxu1 %vm364_vm0, %v347_v21  ;;  %854 = vmatmul.msk.f32.gmra.mxu0 %vm364_vm0, %v347_v21 }
  0x84   : > { %871 = vmatmul.msk.f32.gmra.mxu1 %vm364_vm0, %v348_v22  ;;  %855 = vmatmul.msk.f32.gmra.mxu0 %vm364_vm0, %v348_v22 }
  0x8c   : > { %872 = vmatmul.msk.f32.gmra.mxu1 %vm364_vm0, %v349_v23  ;;  %856 = vmatmul.msk.f32.gmra.mxu0 %vm364_vm0, %v349_v23 }
  0x91   : > { %v495_v26 = vpop.f32.mrf.mxu1  ;;  %v430_v28 = vpop.f32.mrf.mxu0 }
  0x92   : > { %v496_v27 = vadd.f32 %v495_v26, %v1077_v25  ;;  %v431_v37 = vadd.f32 %v430_v28, %v1080_v31 }
  0x94   : > { %v543_v29 = vmul.f32 0.5, %v496_v27 }
  0x96   : > { %886 = vtanh.f32 %v543_v29 }
  0x99   : > { %v498_v30 = vpop.f32.mrf.mxu1  ;;  %v433_v33 = vpop.f32.mrf.mxu0 }
  0x9a   : > { %v499_v32 = vadd.f32 %v498_v30, %v1077_v25  ;;  %v434_v46 = vadd.f32 %v433_v33, %v1080_v31 }
  0x9c   : > { %v887_v34 = vpop.eup %886  ;;  %v544_v35 = vmul.f32 0.5, %v499_v32 }
  0x9d   : > { %v575_v36 = vadd.f32 1.0, %v887_v34 }
  0x9e   : > { %888 = vtanh.f32 %v544_v35 }
  0x9f   : > { %v591_v38 = vmul.f32 0.5, %v575_v36 }
  0xa1   : > { %v501_v39 = vpop.f32.mrf.mxu1  ;;  %v1084_v40 = vadd.f32 %v591_v38, %v431_v37  ;;  %v436_v42 = vpop.f32.mrf.mxu0 }
  0xa2   : > { %v502_v41 = vadd.f32 %v501_v39, %v1077_v25  ;;  %v437_v55 = vadd.f32 %v436_v42, %v1080_v31 }
  0xa4   : > { %v889_v43 = vpop.eup %888  ;;  %v545_v44 = vmul.f32 0.5, %v502_v41 }
  0xa5   : > { %v576_v45 = vadd.f32 1.0, %v889_v43 }
  0xa6   : > { %890 = vtanh.f32 %v545_v44 }
  0xa7   : > { %v592_v47 = vmul.f32 0.5, %v576_v45 }
  0xa9   : > { %v504_v48 = vpop.f32.mrf.mxu1  ;;  %v1088_v49 = vadd.f32 %v592_v47, %v434_v46  ;;  %v439_v51 = vpop.f32.mrf.mxu0 }
  0xaa   : > { %v505_v50 = vadd.f32 %v504_v48, %v1077_v25  ;;  %v440_v0 = vadd.f32 %v439_v51, %v1080_v31 }
  0xac   : > { %v891_v52 = vpop.eup %890  ;;  %v546_v53 = vmul.f32 0.5, %v505_v50 }
  0xad   : > { %v577_v54 = vadd.f32 1.0, %v891_v52 }
  0xae   : > { %892 = vtanh.f32 %v546_v53 }
  0xaf   : > { %v593_v56 = vmul.f32 0.5, %v577_v54 }
  0xb1   : > { %v507_v57 = vpop.f32.mrf.mxu1  ;;  %v1092_v58 = vadd.f32 %v593_v56, %v437_v55  ;;  %v442_v60 = vpop.f32.mrf.mxu0 }
  0xb2   : > { %v508_v59 = vadd.f32 %v507_v57, %v1077_v25  ;;  %v443_v9 = vadd.f32 %v442_v60, %v1080_v31 }
  0xb4   : > { %v893_v61 = vpop.eup %892  ;;  %v547_v62 = vmul.f32 0.5, %v508_v59 }
  0xb5   : > { %v578_v63 = vadd.f32 1.0, %v893_v61 }
  0xb6   : > { %894 = vtanh.f32 %v547_v62 }
  0xb7   : > { %v594_v1 = vmul.f32 0.5, %v578_v63 }
  0xb9   : > { %v510_v2 = vpop.f32.mrf.mxu1  ;;  %v1096_v3 = vadd.f32 %v594_v1, %v440_v0  ;;  %v445_v5 = vpop.f32.mrf.mxu0 }
  0xba   : > { %v511_v4 = vadd.f32 %v510_v2, %v1077_v25  ;;  %v446_v18 = vadd.f32 %v445_v5, %v1080_v31 }
  0xbc   : > { %v895_v6 = vpop.eup %894  ;;  %v548_v7 = vmul.f32 0.5, %v511_v4 }
  0xbd   : > { %v579_v8 = vadd.f32 1.0, %v895_v6 }
  0xbe   : > { %896 = vtanh.f32 %v548_v7 }
  0xbf   : > { %v595_v10 = vmul.f32 0.5, %v579_v8 }
  0xc1   : > { %v513_v11 = vpop.f32.mrf.mxu1  ;;  %v1100_v12 = vadd.f32 %v595_v10, %v443_v9  ;;  %v448_v14 = vpop.f32.mrf.mxu0 }
  0xc2   : > { %v514_v13 = vadd.f32 %v513_v11, %v1077_v25  ;;  %v449_v28 = vadd.f32 %v448_v14, %v1080_v31 }
  0xc4   : > { %v897_v15 = vpop.eup %896  ;;  %v549_v16 = vmul.f32 0.5, %v514_v13 }
  0xc5   : > { %v580_v17 = vadd.f32 1.0, %v897_v15 }
  0xc6   : > { %898 = vtanh.f32 %v549_v16 }
  0xc7   : > { %v596_v19 = vmul.f32 0.5, %v580_v17 }
  0xc9   : > { %v516_v20 = vpop.f32.mrf.mxu1  ;;  %v1104_v21 = vadd.f32 %v596_v19, %v446_v18  ;;  %v451_v23 = vpop.f32.mrf.mxu0 }
  0xca   : > { %v517_v22 = vadd.f32 %v516_v20, %v1077_v25  ;;  %v452_v38 = vadd.f32 %v451_v23, %v1080_v31 }
  0xcc   : > { %v899_v24 = vpop.eup %898  ;;  %v550_v26 = vmul.f32 0.5, %v517_v22 }
  0xcd   : > { %v581_v27 = vadd.f32 1.0, %v899_v24 }
  0xce   : > { %900 = vtanh.f32 %v550_v26 }
  0xcf   : > { %v597_v29 = vmul.f32 0.5, %v581_v27 }
  0xd1   : > { %v519_v30 = vpop.f32.mrf.mxu1  ;;  %v1108_v32 = vadd.f32 %v597_v29, %v449_v28  ;;  %v454_v34 = vpop.f32.mrf.mxu0 }
  0xd2   : > { %v520_v33 = vadd.f32 %v519_v30, %v1077_v25  ;;  %v455_v48 = vadd.f32 %v454_v34, %v1080_v31 }
  0xd4   : > { %v901_v35 = vpop.eup %900  ;;  %v551_v36 = vmul.f32 0.5, %v520_v33 }
  0xd5   : > { %v582_v37 = vadd.f32 1.0, %v901_v35 }
  0xd6   : > { %902 = vtanh.f32 %v551_v36 }
  0xd7   : > { %v598_v39 = vmul.f32 0.5, %v582_v37 }
  0xd9   : > { %v522_v41 = vpop.f32.mrf.mxu1  ;;  %v1112_v42 = vadd.f32 %v598_v39, %v452_v38  ;;  %v457_v44 = vpop.f32.mrf.mxu0 }
  0xda   : > { %v523_v43 = vadd.f32 %v522_v41, %v1077_v25  ;;  %v458_v56 = vadd.f32 %v457_v44, %v1080_v31 }
  0xdc   : > { %v903_v45 = vpop.eup %902  ;;  %v552_v46 = vmul.f32 0.5, %v523_v43 }
  0xdd   : > { %v583_v47 = vadd.f32 1.0, %v903_v45 }
  0xde   : > { %904 = vtanh.f32 %v552_v46 }
  0xdf   : > { %v599_v50 = vmul.f32 0.5, %v583_v47 }
  0xe1   : > { %v525_v51 = vpop.f32.mrf.mxu1  ;;  %v1116_v52 = vadd.f32 %v599_v50, %v455_v48  ;;  %v1118_v53 = vpop.f32.mrf.mxu0 }
  0xe2   : > { %v526_v17 = vadd.f32 %v525_v51, %v1077_v25 }
  0xe4   : > { %v905_v54 = vpop.eup %904  ;;  %v553_v27 = vmul.f32 0.5, %v526_v17  ;;  %v623_v17 = vmax.f32 %v1084_v40, 0.0  ;;  %v665_v40 = vld [vmem:[%s1268_s5 + $0x10] sm:$0xff] }
  0xe5   : > { %v584_v55 = vadd.f32 1.0, %v905_v54 }
  0xe7   : > { %v600_v57 = vmul.f32 0.5, %v584_v55 }
  0xe9   : > { %v528_v59 = vpop.f32.mrf.mxu1  ;;  %v1121_v60 = vadd.f32 %v600_v57, %v458_v56  ;;  %v463_v61 = vpop.f32.mrf.mxu0 }
  0xea   : > { %v529_v14 = vadd.f32 %v528_v59, %v1077_v25  ;;  %v464_v50 = vadd.f32 %v463_v61, %v1080_v31  ;;  %v461_v59 = vadd.f32 %v1118_v53, %v1080_v31  ;;  %v631_v61 = vmax.f32 %v1116_v52, 0.0  ;;  %v677_v53 = vld [vmem:[%s1268_s5 + $0x70] sm:$0xff]  ;;  %v674_v52 = vld [vmem:[%s1268_s5 + $0x58] sm:$0xff] }
  0xec   : > { %v554_v18 = vmul.f32 0.5, %v529_v14  ;;  %v625_v14 = vmax.f32 %v1092_v58, 0.0  ;;  %v639_v58 = vld [vmem:[%s1266_s3] sm:$0x3] }
  0xf1   : > { %v531_v62 = vpop.f32.mrf.mxu1  ;;  %v466_v63 = vpop.f32.mrf.mxu0 }
  0xf2   : > { %v532_v10 = vadd.f32 %v531_v62, %v1077_v25  ;;  %v467_v43 = vadd.f32 %v466_v63, %v1080_v31 }
  0xf4   : > { %v555_v15 = vmul.f32 0.5, %v532_v10  ;;  %v671_v10 = vld [vmem:[%s1268_s5 + $0x40] sm:$0xff] }
  0xf9   : > { %v534_v0 = vpop.f32.mrf.mxu1  ;;  %v469_v1 = vpop.f32.mrf.mxu0 }
  0xfa   : > { %v535_v5 = vadd.f32 %v534_v0, %v1077_v25 }
  0xfc   : > { %v556_v8 = vmul.f32 0.5, %v535_v5  ;;  %v630_v5 = vmax.f32 %v1112_v42, 0.0  ;;  %v675_v42 = vld [vmem:[%s1268_s5 + $0x60] sm:$0xff] }
 0x101   : > { %v537_v2 = vpop.f32.mrf.mxu1  ;;  %v472_v7 = vpop.f32.mrf.mxu0 }
 0x102   : > { %v538_v4 = vadd.f32 %v537_v2, %v1077_v25  ;;  %v473_v30 = vadd.f32 %v472_v7, %v1080_v31  ;;  %v628_v7 = vmax.f32 %v1104_v21, 0.0  ;;  %v670_v21 = vld [vmem:[%s1268_s5 + $0x38] sm:$0xff] }
 0x104   : > { %v557_v6 = vmul.f32 0.5, %v538_v4  ;;  %v632_v4 = vmax.f32 %v1121_v60, 0.0  ;;  %v676_v60 = vld [vmem:[%s1268_s5 + $0x68] sm:$0xff] }
 0x106   : > { %906 = vtanh.f32 %v557_v6  ;;  %v629_v6 = vmax.f32 %v1108_v32, 0.0  ;;  %v672_v32 = vld [vmem:[%s1268_s5 + $0x48] sm:$0xff] }
 0x107   : > { %908 = vtanh.f32 %v556_v8  ;;  %v673_v8 = vld [vmem:[%s1268_s5 + $0x50] sm:$0xff] }
 0x109   : > { %v540_v9 = vpop.f32.mrf.mxu1  ;;  %v475_v19 = vpop.f32.mrf.mxu0 }
 0x10a   : > { %v541_v11 = vadd.f32 %v540_v9, %v1077_v25  ;;  %v476_v24 = vadd.f32 %v475_v19, %v1080_v31  ;;  %v470_v25 = vadd.f32 %v469_v1, %v1080_v31  ;;  %v678_v31 = vld [vmem:[%s1268_s5 + $0x78] sm:$0xff]  ;;  %v627_v9 = vmax.f32 %v1100_v12, 0.0  ;;  %v668_v12 = vld [vmem:[%s1268_s5 + $0x28] sm:$0xff] }
 0x10b   : > { %680 = vmatpush.msra.mxu3 %v678_v31 }
 0x10c   : > { %v558_v13 = vmul.f32 0.5, %v541_v11  ;;  %v907_v16 = vpop.eup %906  ;;  %v626_v11 = vmax.f32 %v1096_v3, 0.0  ;;  %v666_v3 = vld [vmem:[%s1268_s5 + $0x18] sm:$0xff] }
 0x10d   : > { %v909_v20 = vpop.eup %908  ;;  %v589_v22 = vadd.f32 1.0, %v907_v16  ;;  %681 = vmatpush.msra.mxu3 %v677_v53  ;;  %v624_v16 = vmax.f32 %v1088_v49, 0.0  ;;  %v664_v49 = vld [vmem:[%s1268_s5 + $0x8] sm:$0xff] }
 0x10e   : > { %910 = vtanh.f32 %v558_v13  ;;  %v588_v28 = vadd.f32 1.0, %v909_v20  ;;  %v669_v13 = vld [vmem:[%s1268_s5 + $0x30] sm:$0xff]  ;;  %v660_v20 = vld [vmem:[%s1267_s4] sm:$0xff] }
 0x10f   : > { %912 = vtanh.f32 %v555_v15  ;;  %v605_v29 = vmul.f32 0.5, %v589_v22  ;;  %682 = vmatpush.msra.mxu3 %v676_v60  ;;  %v667_v15 = vld [vmem:[%s1268_s5 + $0x20] sm:$0xff] }
 0x110   : > { %914 = vtanh.f32 %v554_v18  ;;  %v604_v37 = vmul.f32 0.5, %v588_v28  ;;  %v663_v18 = vld [vmem:[%s1268_s5] sm:$0xff] }
 0x111   : > { %916 = vtanh.f32 %v553_v27  ;;  %v621_v39 = vadd.f32 %v605_v29, %v473_v30  ;;  %683 = vmatpush.msra.mxu3 %v675_v42  ;;  %v701_v27 = vstv %s700_s10  ;;  %v1203_v30 = vld [vmem:[%s1271_s8] sm:$0xff] }
 0x112   : > { %v620_v47 = vadd.f32 %v604_v37, %v470_v25  ;;  %vm706_vm1 = vcmp.ne.f32.partialorder %v1203_v30, 0.0  ;;  %v732_v37 = vld [vmem:[%s1269_s6 + $0x78] sm:$0xff] }
 0x113   : > { %v637_v46 = vmax.f32 %v621_v39, 0.0  ;;  %684 = vmatpush.msra.mxu3 %v674_v52  ;;  %v730_v39 = vld [vmem:[%s1269_s6 + $0x68] sm:$0xff] }
 0x114   : > { %v911_v23 = vpop.eup %910  ;;  %v636_v55 = vmax.f32 %v620_v47, 0.0  ;;  %v724_v47 = vld [vmem:[%s1269_s6 + $0x38] sm:$0xff] }
 0x115   : > { %v590_v26 = vadd.f32 1.0, %v911_v23  ;;  %v913_v34 = vpop.eup %912  ;;  %685 = vmatpush.msra.mxu3 %v673_v8 }
 0x116   : > { %v587_v36 = vadd.f32 1.0, %v913_v34  ;;  %v915_v41 = vpop.eup %914 }
 0x117   : > { %v606_v33 = vmul.f32 0.5, %v590_v26  ;;  %v586_v44 = vadd.f32 1.0, %v915_v41  ;;  %v917_v48 = vpop.eup %916  ;;  %686 = vmatpush.msra.mxu3 %v672_v32  ;;  %v729_v41 = vld [vmem:[%s1269_s6 + $0x60] sm:$0xff] }
 0x118   : > { %v603_v45 = vmul.f32 0.5, %v587_v36  ;;  %v585_v51 = vadd.f32 1.0, %v917_v48  ;;  %v723_v48 = vld [vmem:[%s1269_s6 + $0x30] sm:$0xff] }
 0x119   : > { %v622_v35 = vadd.f32 %v606_v33, %v476_v24  ;;  %v602_v54 = vmul.f32 0.5, %v586_v44  ;;  %687 = vmatpush.msra.mxu3 %v671_v10  ;;  %v727_v44 = vld [vmem:[%s1269_s6 + $0x50] sm:$0xff] }
 0x11a   : > { %v619_v56 = vadd.f32 %v603_v45, %v467_v43  ;;  %v601_v57 = vmul.f32 0.5, %v585_v51  ;;  %v728_v43 = vld [vmem:[%s1269_s6 + $0x58] sm:$0xff]  ;;  %v726_v45 = vld [vmem:[%s1269_s6 + $0x48] sm:$0xff]  ;;  %v721_v51 = vld [vmem:[%s1269_s6 + $0x20] sm:$0xff] }
 0x11b   : > { %v638_v38 = vmax.f32 %v622_v35, 0.0  ;;  %v618_v0 = vadd.f32 %v602_v54, %v464_v50  ;;  %688 = vmatpush.msra.mxu3 %v670_v21  ;;  %v722_v50 = vld [vmem:[%s1269_s6 + $0x28] sm:$0xff]  ;;  %v720_v54 = vld [vmem:[%s1269_s6 + $0x18] sm:$0xff] }
 0x11c   : > { %v635_v62 = vmax.f32 %v619_v56, 0.0  ;;  %v617_v1 = vadd.f32 %v601_v57, %v461_v59  ;;  %v718_v56 = vld [vmem:[%s1269_s6 + $0x8] sm:$0xff] }
 0x11d   : > { %640 = vmatpush.xpose.msra.mxu2 %v638_v38  ;;  %v634_v63 = vmax.f32 %v618_v0, 0.0  ;;  %689 = vmatpush.msra.mxu3 %v669_v13  ;;  %v731_v38 = vld [vmem:[%s1269_s6 + $0x70] sm:$0xff] }
 0x11e   : > { %v633_v2 = vmax.f32 %v617_v1, 0.0 }
 0x11f   : > { %690 = vmatpush.msra.mxu3 %v668_v12 }
 0x121   : > { %641 = vmatpush.xpose.msra.mxu2 %v637_v46  ;;  %691 = vmatpush.msra.mxu3 %v667_v15  ;;  %v725_v46 = vld [vmem:[%s1269_s6 + $0x40] sm:$0xff] }
 0x123   : > { %692 = vmatpush.msra.mxu3 %v666_v3 }
 0x125   : > { %642 = vmatpush.xpose.msra.mxu2 %v636_v55  ;;  %693 = vmatpush.msra.mxu3 %v665_v40  ;;  %v719_v55 = vld [vmem:[%s1269_s6 + $0x10] sm:$0xff] }
 0x127   : > { %694 = vmatpush.msra.mxu3 %v664_v49 }
 0x129   : > { %643 = vmatpush.xpose.msra.mxu2 %v635_v62  ;;  %695 = vmatpush.msra.mxu3 %v663_v18  ;;  %v717_v62 = vld [vmem:[%s1269_s6] sm:$0xff] }
 0x12b   : > { %733 = vmatpush.msrb.mxu3 %v732_v37 }
 0x12d   : > { %644 = vmatpush.xpose.msra.mxu2 %v634_v63  ;;  %734 = vmatpush.msrb.mxu3 %v731_v38 }
 0x12f   : > { %735 = vmatpush.msrb.mxu3 %v730_v39 }
 0x131   : > { %645 = vmatpush.xpose.msra.mxu2 %v633_v2  ;;  %736 = vmatpush.msrb.mxu3 %v729_v41 }
 0x133   : > { %737 = vmatpush.msrb.mxu3 %v728_v43 }
 0x135   : > { %646 = vmatpush.xpose.msra.mxu2 %v632_v4  ;;  %738 = vmatpush.msrb.mxu3 %v727_v44 }
 0x137   : > { %739 = vmatpush.msrb.mxu3 %v726_v45 }
 0x139   : > { %647 = vmatpush.xpose.msra.mxu2 %v631_v61  ;;  %740 = vmatpush.msrb.mxu3 %v725_v46 }
 0x13b   : > { %741 = vmatpush.msrb.mxu3 %v724_v47 }
 0x13d   : > { %648 = vmatpush.xpose.msra.mxu2 %v630_v5  ;;  %742 = vmatpush.msrb.mxu3 %v723_v48 }
 0x13f   : > { %743 = vmatpush.msrb.mxu3 %v722_v50 }
 0x141   : > { %649 = vmatpush.xpose.msra.mxu2 %v629_v6  ;;  %744 = vmatpush.msrb.mxu3 %v721_v51 }
 0x143   : > { %745 = vmatpush.msrb.mxu3 %v720_v54 }
 0x145   : > { %650 = vmatpush.xpose.msra.mxu2 %v628_v7  ;;  %746 = vmatpush.msrb.mxu3 %v719_v55 }
 0x147   : > { %747 = vmatpush.msrb.mxu3 %v718_v56 }
 0x149   : > { %651 = vmatpush.xpose.msra.mxu2 %v627_v9  ;;  %748 = vmatpush.msrb.mxu3 %v717_v62 }
 0x14d   : > { %652 = vmatpush.xpose.msra.mxu2 %v626_v11 }
 0x151   : > { %653 = vmatpush.xpose.msra.mxu2 %v625_v14 }
 0x155   : > { %654 = vmatpush.xpose.msra.mxu2 %v624_v16 }
 0x159   : > { %655 = vmatpush.xpose.msra.mxu2 %v623_v17 }
 0x15c   : > { %656 = vmatmul.f32.vlgmr.msra.gmra.mxu2 %v639_v58 }
 0x15d   : > { %756 = vmatpush.msrb.mxu2 %v678_v31 }
 0x15f   : > { %757 = vmatpush.msrb.mxu2 %v677_v53 }
 0x161   : > { %758 = vmatpush.msrb.mxu2 %v676_v60 }
 0x163   : > { %759 = vmatpush.msrb.mxu2 %v675_v42 }
 0x165   : > { %760 = vmatpush.msrb.mxu2 %v674_v52 }
 0x167   : > { %761 = vmatpush.msrb.mxu2 %v673_v8 }
 0x169   : > { %762 = vmatpush.msrb.mxu2 %v672_v32 }
 0x16b   : > { %763 = vmatpush.msrb.mxu2 %v671_v10 }
 0x16d   : > { %764 = vmatpush.msrb.mxu2 %v670_v21 }
 0x16f   : > { %765 = vmatpush.msrb.mxu2 %v669_v13 }
 0x171   : > { %766 = vmatpush.msrb.mxu2 %v668_v12 }
 0x173   : > { %767 = vmatpush.msrb.mxu2 %v667_v15 }
 0x175   : > { %768 = vmatpush.msrb.mxu2 %v666_v3 }
 0x177   : > { %769 = vmatpush.msrb.mxu2 %v665_v40 }
 0x179   : > { %770 = vmatpush.msrb.mxu2 %v664_v49 }
 0x17b   : > { %771 = vmatpush.msrb.mxu2 %v663_v18 }
 0x1df   : > { %v657_v19 = vpop.f32.mrf.mxu2 }
 0x1e0   : > { %v661_v22 = vperm.slane %v657_v19, 0  ;;  %v679_v24 = vperm.slane %v657_v19, 1 }
 0x1e2   : > { %v662_v23 = vmul.f32 %v661_v22, %v660_v20 }
 0x1e4   : > { %696 = vmatmul.f32.vlgmr.msra.gmra.mxu3 %v662_v23 }
 0x267   : > { %v697_v26 = vpop.f32.mrf.mxu3 }
 0x268   : > { %v698_v28 = vadd.f32 %v697_v26, %v679_v24 }
 0x26a   : > { %v702_v29 = vadd.f32 %v701_v27, %v698_v28 }
 0x26c   : > { %v703_v33 = vmul.f32 0.01, %v702_v29 }
 0x26e   : > { %v704_v34 = vmax.f32 %v702_v29, %v703_v33 }
 0x270   : > { %v707_v35 = vsel %vm706_vm1, %v704_v34, 0.0 }
 0x271   : > { %708 = vrot.lane.b32.xlu0 %v707_v35, %s930_s7 }
 0x2e3   : > { %v709_v25 = vpop.permute.xlu0 %708 }
 0x2e4   : > { %v710_v36 = vmax.f32 %v707_v35, %v709_v25 }
 0x2e6   : > { %711 = vrot.lane.b32.xlu0 %v710_v36, %s931_s15 }
 0x358   : > { %v712_v57 = vpop.permute.xlu0 %711 }
 0x359   : > { %v713_v59 = vmax.f32 %v710_v36, %v712_v57 }
 0x35b   : > { %714 = vrot.lane.b32.xlu1 %v713_v59, %s932_s26 }
 0x3cd   : > { %v715_v0 = vpop.permute.xlu1 %714 }
 0x3ce   : > { %v716_v63 = vmax.f32 %v713_v59, %v715_v0 }
 0x3d0   : > { %749 = vmatmul.f32.vlgmr.msrb.gmra.mxu3 %v716_v63 }
 0x453   : > { %v750_v1 = vpop.f32.mrf.mxu3 }
 0x454   : > { %v753_v2 = vsub.f32 %v707_v35, %v750_v1 }
 0x456   : > { %v754_v4 = vmul.f32 1.442695, %v753_v2 }
 0x458   : > { %918 = vpow2.f32 %v754_v4 }
 0x45e   : > { %v919_v61 = vpop.eup %918 }
 0x45f   : > { %772 = vmatmul.f32.vlgmr.msrb.gmra.mxu2 %v919_v61 }
 0x4e2   : > { %v773_v5 = vpop.f32.mrf.mxu2 }
 0x4e3   : > { %920 = vrcp.f32 %v773_v5 }
 0x4e9   : > { %v921_v31 = vpop.eup %920 }
 0x4ea   : > { %v777_v53 = vmul.f32 %v921_v31, %v919_v61 }
 0x4ec   : > { %v778_v60 = vmul.f32 %v777_v53, %v1203_v30 }
 0x4ee   : > { %779 = vst [vmem:[%s333_s13] sm:$0xff] %v778_v60 }
 0x4ef PF: > { %s20_s11 = sadd.s32 1, %s928_s11  }
 0x4f0   : > { %p17_p5 = scmp.ge.s32.totalorder %s20_s11, 4  }
 0x4f2   :  { %19 = sbr.rel (!%p17_p5) target bundleno = 2 (0x2), region = 86 }

</bundles_post_ra>
